<compile_context>
chip_gen: v6e
topology: v6e:2x2x1
jax: 0.10.0
libtpu: 0.0.40
codegen_flags: <defaults>
</compile_context>

<pallas_src>
import functools

import jax
import jax.numpy as jnp
from jax.experimental import pallas as pl
from jax.experimental.pallas import tpu as pltpu

_LANES = 1024                    # lane-dense last dim (multiple of 128)
_SMALL_N_FALLBACK = 64 * 1024    # below this, fused XLA elementwise wins
_TARGET_STEPS = 8                # >= 4 grid steps per TensorCore on v7x
_MIN_BLOCK_BYTES = 256 * 1024    # keep the ~0.35us/step overhead amortized


def _h_sigmoid_kernel(x_ref, o_ref):
    x = x_ref[...]
    # relu6(x + 3) / 6  ==  clamp(x + 3, 0, 6) * (1/6)
    o_ref[...] = (jnp.clip(x + 3.0, 0.0, 6.0) * (1.0 / 6.0)).astype(o_ref.dtype)


def _h_sigmoid_jnp(x):
    return jnp.clip(x + 3.0, 0.0, 6.0) * (1.0 / 6.0)


def _round_up(n, m):
    return ((n + m - 1) // m) * m


def _sublane_pack(dtype):
    # Rows per native packed sublane tile: 8 (32-bit), 16 (16-bit), 32 (8-bit).
    bits = jnp.dtype(dtype).itemsize * 8
    if bits >= 32:
        return 8
    if bits == 16:
        return 16
    return 32


@functools.lru_cache(maxsize=None)
def _chip_tiling_config():
    """Return (max_block_bytes, vmem_limit_bytes) for the local chip."""
    vmem_cap = 64 << 20  # conservative default == v7x per-TC VMEM
    try:
        info = pltpu.get_tpu_info()
        vmem_cap = int(getattr(info, "vmem_capacity_bytes", vmem_cap))
    except Exception:
        pass
    if vmem_cap >= (96 << 20):       # v5e / v6e: 128 MiB VMEM
        return 8 << 20, 64 << 20     # 8 MiB blocks, 64 MiB scoped VMEM
    return 4 << 20, 32 << 20         # v7x: 4 MiB blocks, 32 MiB scoped VMEM


def _h_sigmoid_2d(x2):
    """Run the kernel on a lane-dense (rows, _LANES) slab (no copies)."""
    rows, lanes = x2.shape
    assert lanes == _LANES
    dtype = x2.dtype
    itemsize = jnp.dtype(dtype).itemsize
    pack = _sublane_pack(dtype)
    max_block_bytes, vmem_limit = _chip_tiling_config()

    row_bytes = _LANES * itemsize
    max_tile_r = max(pack, (max_block_bytes // row_bytes) // pack * pack)
    min_tile_r = max(pack, _round_up(pl.cdiv(_MIN_BLOCK_BYTES, row_bytes), pack))

    tile_r = _round_up(pl.cdiv(rows, _TARGET_STEPS), pack)
    tile_r = max(tile_r, min_tile_r)
    tile_r = min(tile_r, max_tile_r)
    tile_r = min(tile_r, max(pack, (rows // pack) * pack))  # never exceed array

    grid = (pl.cdiv(rows, tile_r),)  # last block may be partial (masked writes)

    n = rows * _LANES
    cost = pl.CostEstimate(
        flops=4 * n, transcendentals=0, bytes_accessed=2 * n * itemsize)

    return pl.pallas_call(
        _h_sigmoid_kernel,
        out_shape=jax.ShapeDtypeStruct((rows, _LANES), dtype),
        grid=grid,
        in_specs=[pl.BlockSpec((tile_r, _LANES), lambda i: (i, 0))],
        out_specs=pl.BlockSpec((tile_r, _LANES), lambda i: (i, 0)),
        compiler_params=pltpu.CompilerParams(
            dimension_semantics=("parallel",),
            vmem_limit_bytes=vmem_limit,
        ),
        cost_estimate=cost,
    )(x2)


def h_sigmoid(x):
    """Elementwise hard-sigmoid: relu6(x + 3) / 6 (matches torch h_sigmoid)."""
    if not jnp.issubdtype(x.dtype, jnp.floating):
        # Match torch's true-division semantics: promote to float.
        x = x.astype(jnp.float32)

    orig_shape = x.shape
    n = x.size
    if n == 0 or n < _SMALL_N_FALLBACK:
        # Tiny tensors: kernel dispatch / reshape overhead dwarfs the work.
        return _h_sigmoid_jnp(x)

    x_flat = x.reshape(-1)
    main_n = (n // _LANES) * _LANES

    if main_n == n:
        # Common case: zero-copy lane-dense view — no padding, no slicing.
        out2 = _h_sigmoid_2d(x_flat.reshape(-1, _LANES))
        return out2.reshape(orig_shape)

    # Non-divisible size: kernel on the 1024-aligned prefix, plain jnp on the
    # (<1024-element) tail.  Avoids materializing a padded input copy.
    out_main = _h_sigmoid_2d(x_flat[:main_n].reshape(-1, _LANES)).reshape(-1)
    out_tail = _h_sigmoid_jnp(x_flat[main_n:])
    return jnp.concatenate([out_main, out_tail]).reshape(orig_shape)


if __name__ == "__main__":
    key = jax.random.PRNGKey(0)
    k1, k2, k3 = jax.random.split(key, 3)

    def ref(v):
        return jnp.minimum(jnp.maximum(v + 3.0, 0.0), 6.0) / 6.0

    # 1) Small NCHW activation from the module spec (fast jnp fallback path).
    x1 = jax.random.normal(k1, (2, 4, 16, 16), dtype=jnp.float32) * 4.0
    o1 = jax.block_until_ready(h_sigmoid(x1))
    assert o1.shape == x1.shape and o1.dtype == x1.dtype
    assert jnp.allclose(o1, ref(x1), atol=1e-6), "mismatch (small path)"

    # 2) Larger activation exercising the Pallas kernel (1024-divisible size).
    x2 = jax.random.normal(k2, (2, 32, 64, 64), dtype=jnp.float32) * 4.0
    o2 = jax.block_until_ready(h_sigmoid(x2))
    assert o2.shape == x2.shape and o2.dtype == x2.dtype
    assert jnp.allclose(o2, ref(x2), atol=1e-6), "mismatch (kernel path)"

    # 3) Non-1024-divisible size: kernel prefix + jnp tail path.
    x3 = jax.random.normal(k3, (70_000,), dtype=jnp.float32) * 4.0
    o3 = jax.block_until_ready(h_sigmoid(x3))
    assert o3.shape == x3.shape and o3.dtype == x3.dtype
    assert jnp.allclose(o3, ref(x3), atol=1e-6), "mismatch (prefix+tail path)"

    print("KERNEL_OK")
</pallas_src>

<mosaic_0001>
module attributes {stable_mosaic.version = 11 : i64} {
  func.func @_h_sigmoid_kernel(%arg0: i32, %arg1: memref<64x1024xf32, #tpu.memory_space<vmem>>, %arg2: memref<64x1024xf32, #tpu.memory_space<vmem>>) attributes {dimension_semantics = [#tpu.dimension_semantics<parallel>], iteration_bounds = array<i64: 4>, scalar_prefetch = 0 : i64, scratch_operands = 0 : i64, tpu.core_type = #tpu.core_type<tc>, window_params = [{transform_indices = @transform_0, window_bounds = array<i64: 64, 1024>}, {transform_indices = @transform_1, window_bounds = array<i64: 64, 1024>}]} {
    %c0 = arith.constant 0 : index
    %c0_0 = arith.constant 0 : index
    %0 = vector.load %arg1[%c0, %c0_0] : memref<64x1024xf32, #tpu.memory_space<vmem>>, vector<64x1024xf32>
    %cst = arith.constant 3.000000e+00 : f32
    %1 = vector.broadcast %cst : f32 to vector<64x1024xf32>
    %2 = arith.addf %0, %1 : vector<64x1024xf32>
    %cst_1 = arith.constant 0.000000e+00 : f32
    %cst_2 = arith.constant 6.000000e+00 : f32
    %3 = vector.broadcast %cst_1 : f32 to vector<64x1024xf32>
    %4 = arith.maximumf %3, %2 : vector<64x1024xf32>
    %5 = vector.broadcast %cst_2 : f32 to vector<64x1024xf32>
    %6 = arith.minimumf %5, %4 : vector<64x1024xf32>
    %cst_3 = arith.constant 0.166666672 : f32
    %7 = vector.broadcast %cst_3 : f32 to vector<64x1024xf32>
    %8 = arith.mulf %6, %7 : vector<64x1024xf32>
    %c0_4 = arith.constant 0 : index
    %c0_5 = arith.constant 0 : index
    %9 = vector.load %arg2[%c0_4, %c0_5] : memref<64x1024xf32, #tpu.memory_space<vmem>>, vector<64x1024xf32>
    tpu.vector_store %arg2[%c0_4, %c0_5], %8 {strides = array<i32>} : memref<64x1024xf32, #tpu.memory_space<vmem>>, vector<64x1024xf32>,
    return
  }
  func.func @transform_0(%arg0: i32) -> (i32, i32) {
    %c0_i32 = arith.constant 0 : i32
    %c0_i32_0 = arith.constant 0 : i32
    return %arg0, %c0_i32 : i32, i32
  }
  func.func @transform_1(%arg0: i32) -> (i32, i32) {
    %c0_i32 = arith.constant 0 : i32
    %c0_i32_0 = arith.constant 0 : i32
    return %arg0, %c0_i32 : i32, i32
  }
}

</mosaic_0001>

<bundles_post_ra>
// kernel: tpu_custom_call.1
= control target key start
LH: loop header
LB: loop body
LE: loop exit
PB: predicated region body
PF: predicated region fallthrough
CT: control target
= control target key end

     0   :  { %6 = vsyncpa [#allocation3], 0  ;;  %s1079_s0 = inlined_call_operand.hbm [shape: f32[256,1024], index: 0, kind: input, shape index: {}]   ;;  %s1080_s1 = inlined_call_operand.hbm [shape: f32[256,1024], index: 1, kind: output, shape index: {}]  }
   0x1   :  { %8 = vsyncpa [#allocation3 + $0x1], 0 }
   0x2   :  { %9 = vsyncpa [#allocation4], 0 }
   0x3   :  { %11 = vsyncpa [#allocation4 + $0x1], 0  ;;  %s790_s6 = smov 0   ;;  %s792_s7 = smov 0  }
   0x4   :  { %s794_s8 = smov 0   ;;  %s796_s9 = smov 0  }
   0x5 LB: > { %s811_s10 = sadd.s32 4294967295, %s772_s9   ;;  %s610_s11 = sadd.s32 4294967294, %s772_s9   ;;  %s772_s9 = sphi %s796_s9, %s1094_s9   ;;  %s768_s8 = sphi %s794_s8, %s1093_s8   ;;  %s764_s7 = sphi %s792_s7, %s1092_s7   ;;  %s760_s6 = sphi %s790_s6, %s1091_s6  }
   0x6   : > { %s815_s12 = sadd.s32 1, %s772_s9   ;;  %s24_s13 = sadd.s32 1, %s768_s8 }
   0x7   : > { %s21_s14 = ssub.s32 %s772_s9, %s815_s12  ;;  %p31_p0 = scmp.ne.s32.totalorder %s768_s8, %s764_s7 }
   0x8   : > { %p22_p1 = scmp.eq.s32.totalorder %s21_s14, 0  ;;  %p32_p2 = scmp.eq.s32.totalorder %s772_s9, 0 }
   0x9   : > { %p37_p3 = scmp.ne.s32.totalorder %s764_s7, %s760_s6  ;;  %p38_p4 = scmp.eq.s32.totalorder %s811_s10, 0 }
   0xa   : > { %s827_s15 = scalar_select %p22_p1, %s768_s8, %s24_s13  }
   0xb   : > { %p829_p5 = por %p32_p2, %p31_p0  ;;  %p833_p6 = por %p38_p4, %p37_p3 }
   0xc   : > { %p61_p7 = scmp.eq.s32.totalorder %s811_s10, 3  ;;  %p67_p8 = scmp.eq.s32.totalorder %s610_s11, 3 }
   0xd   : > { %s1084_s17 = scalar_select %p833_p6, 1, 0 }
   0xe   : > { %p642_p9 = scmp.lt.s32.totalorder %s772_s9, 4  ;;  %p839_p10 = por %p61_p7, %p31_p0 }
   0xf   : > { %p843_p11 = por %p67_p8, %p37_p3  ;;  %s87_s20 = sand.u32 1, %s768_s8  }
  0x10   : > { %s1085_s18 = scalar_select %p839_p10, 1, 0 }
  0x11   : > { %s1086_s19 = scalar_select %p843_p11, 1, 0 }
  0x12   : > { %s627_s21 = sshll.u32 %s772_s9, 13  ;;  %s613_s22 = sshll.u32 %s87_s20, 9 }
  0x13   : > { %s852_s25 = scalar_lea.hbm %s1079_s0, %s627_s21  ;;  %s91_s26 = scalar_lea.vmem [#allocation2], %s613_s22 }
  0x14   : > { %s99_s27 = sshll.u32 %s91_s26, 4  ;;  %p856_p12 = pnand %p642_p9, %p829_p5  ;;  %s860_s27 = int_to_ptr.vmem [resolvable:$true] %s99_s27 }
  0x15   : > { %s862_s29 = scalar_lea.sflag [#allocation3], %s87_s20  ;;  %s680_s30 = scalar_lea.hbm %s852_s25, 8192 }
  0x16   : > { %p681_p13 = scmp.ne.s32.totalorder %s852_s25, %s680_s30  ;;  %p682_p0 = pneg %p856_p12 }
  0x17   : > { %s685_s4 = scalar_lea.hbm %s1079_s0, 32768  ;;  %p686_p3 = scmp.lt.s32.totalorder %s852_s25, %s1079_s0 }
  0x18   : > { %p683_p1 = pnand %p682_p0, %p681_p13  ;;  %p687_p4 = scmp.lt.s32.totalorder %s685_s4, %s680_s30 }
  0x1a   : > { %p684_p2 = pneg %p683_p1  ;;  %p688_p5 = por %p687_p4, %p686_p3 }
  0x1c   : > { %p689_p7 = pnand %p688_p5, %p684_p2 }
  0x1e   : > { %692 = shalt.err (!%p689_p7)
}
  0x1f   : > { %s693_s13 = scalar_lea.vmem %s860_s27, 8192  ;;  %s774_s14 = smov [#allocation2]  }
  0x20   : > { %p694_p8 = scmp.ne.s32.totalorder %s860_s27, %s693_s13  ;;  %s698_s16 = sshll.u32 %s774_s14, 4  ;;  %s699_s16 = int_to_ptr.vmem [resolvable:$false] %s698_s16 }
  0x21   : > { %s700_s20 = scalar_lea.vmem %s699_s16, 16384  ;;  %p701_p1 = scmp.lt.s32.totalorder %s860_s27, %s699_s16 }
  0x22   : > { %p696_p9 = pnand %p694_p8, %p682_p0  ;;  %p702_p11 = scmp.lt.s32.totalorder %s700_s20, %s693_s13 }
  0x24   : > { %p697_p13 = pneg %p696_p9  ;;  %p703_p10 = por %p702_p11, %p701_p1 }
  0x26   : > { %p704_p6 = pnand %p703_p10, %p697_p13 }
  0x28   : > { %707 = shalt.err (!%p704_p6)
}
  0x29   : > { %s775_s21 = smov 1024   ;;  %s776_s22 = smov 64  }
  0x2a   : > { %637 = dma.hbm_to_vmem [thread:$0]  (!%p856_p12), %s852_s25, 8192, %s860_s27, %s862_s29, %s775_s21, %s775_s21, %s776_s22  }
  0x2b   : > { %p617_p0 = scmp.ge.s32.totalorder %s772_s9, 1  ;;  %p107_p2 = scmp.lt.s32.totalorder %s772_s9, 5 }
  0x2d   : > { %p108_p3 = pnand %p617_p0, %p107_p2 }
  0x2e   : > { %s886_s23 = sand.u32 (!%p108_p3), 1, %s764_s7   ;;  %p1088_p6 = scmp.ne.s32.totalorder (!%p108_p3), %s1084_s17, 0 }
  0x2f   : > { %111 = sbr.rel (%p108_p3) target bundleno = 147 (0x93), region = 24  ;;  %s618_s24 = sshll.u32 (!%p108_p3), %s886_s23, 9 }
  0x30   : > { %s114_s26 = scalar_lea.sflag (!%p108_p3), [#allocation3], %s886_s23  ;;  %s892_s30 = scalar_lea.vmem (!%p108_p3), [#allocation2], %s618_s24 }
  0x34   : > { %751 = dma.done.wait (%p1088_p6), %s114_s26, 8192  }
  0x35   : > { %753 = vsyncadd (%p1088_p6), %s114_s26, 4294959104  ;;  %v138_v0 = vld [vmem:[%s892_s30] sm:$0xff]  ;;  %v139_v1 = vld [vmem:[%s892_s30 + $0x8] sm:$0xff]  ;;  %s914_s17 = scalar_lea.vmem [#allocation5], %s618_s24  ;;  %s629_s25 = sshll.u32 %s811_s10, 13 }
  0x36   : > { %v140_v2 = vld [vmem:[%s892_s30 + $0x10] sm:$0xff]  ;;  %v202_v3 = vadd.f32 3.0, %v138_v0  ;;  %v203_v4 = vadd.f32 3.0, %v139_v1  ;;  %v141_v6 = vld [vmem:[%s892_s30 + $0x18] sm:$0xff]  ;;  %v142_v7 = vld [vmem:[%s892_s30 + $0x20] sm:$0xff]  ;;  %s537_s27 = sshll.u32 %s914_s17, 4  ;;  %s1032_s29 = scalar_lea.hbm %s1080_s1, %s629_s25  ;;  %s1034_s27 = int_to_ptr.vmem [resolvable:$true] %s537_s27 }
  0x37   : > { %v204_v5 = vadd.f32 3.0, %v140_v2  ;;  %v143_v8 = vld [vmem:[%s892_s30 + $0x28] sm:$0xff]  ;;  %v205_v9 = vadd.f32 3.0, %v141_v6  ;;  %v206_v10 = vadd.f32 3.0, %v142_v7  ;;  %v144_v12 = vld [vmem:[%s892_s30 + $0x30] sm:$0xff]  ;;  %v145_v13 = vld [vmem:[%s892_s30 + $0x38] sm:$0xff] }
  0x38   : > { %v207_v11 = vadd.f32 3.0, %v143_v8  ;;  %v266_v14 = vmax.f32 %v202_v3, 0.0  ;;  %v267_v15 = vmax.f32 %v203_v4, 0.0  ;;  %v208_v17 = vadd.f32 3.0, %v144_v12  ;;  %v146_v22 = vld [vmem:[%s892_s30 + $0x40] sm:$0xff]  ;;  %v147_v23 = vld [vmem:[%s892_s30 + $0x48] sm:$0xff] }
  0x39   : > { %v268_v16 = vmax.f32 %v204_v5, 0.0  ;;  %v269_v18 = vmax.f32 %v205_v9, 0.0  ;;  %v270_v19 = vmax.f32 %v206_v10, 0.0  ;;  %v209_v21 = vadd.f32 3.0, %v145_v13  ;;  %v148_v28 = vld [vmem:[%s892_s30 + $0x50] sm:$0xff]  ;;  %v149_v29 = vld [vmem:[%s892_s30 + $0x58] sm:$0xff] }
  0x3a   : > { %v271_v20 = vmax.f32 %v207_v11, 0.0  ;;  %v330_v24 = vmin.f32 %v266_v14, 6.0  ;;  %v331_v25 = vmin.f32 %v267_v15, 6.0  ;;  %v272_v27 = vmax.f32 %v208_v17, 0.0  ;;  %v150_v34 = vld [vmem:[%s892_s30 + $0x60] sm:$0xff]  ;;  %v151_v35 = vld [vmem:[%s892_s30 + $0x68] sm:$0xff] }
  0x3b   : > { %v332_v26 = vmin.f32 %v268_v16, 6.0  ;;  %v333_v30 = vmin.f32 %v269_v18, 6.0  ;;  %v334_v31 = vmin.f32 %v270_v19, 6.0  ;;  %v273_v33 = vmax.f32 %v209_v21, 0.0  ;;  %v152_v50 = vld [vmem:[%s892_s30 + $0x70] sm:$0xff]  ;;  %v153_v51 = vld [vmem:[%s892_s30 + $0x78] sm:$0xff] }
  0x3c   : > { %v335_v32 = vmin.f32 %v271_v20, 6.0  ;;  %v394_v36 = vmul.f32 0.16666667, %v330_v24  ;;  %v395_v37 = vmul.f32 0.16666667, %v331_v25  ;;  %v336_v42 = vmin.f32 %v272_v27, 6.0 }
  0x3d   : > { %v396_v38 = vmul.f32 0.16666667, %v332_v26  ;;  %v397_v39 = vmul.f32 0.16666667, %v333_v30  ;;  %v398_v40 = vmul.f32 0.16666667, %v334_v31 }
  0x3e   : > { %v399_v41 = vmul.f32 0.16666667, %v335_v32  ;;  %458 = vst [vmem:[%s914_s17] sm:$0xff] %v394_v36  ;;  %459 = vst [vmem:[%s914_s17 + $0x8] sm:$0xff] %v395_v37  ;;  %v337_v43 = vmin.f32 %v273_v33, 6.0  ;;  %v210_v44 = vadd.f32 3.0, %v146_v22  ;;  %v211_v45 = vadd.f32 3.0, %v147_v23 }
  0x3f   : > { %460 = vst [vmem:[%s914_s17 + $0x10] sm:$0xff] %v396_v38  ;;  %461 = vst [vmem:[%s914_s17 + $0x18] sm:$0xff] %v397_v39  ;;  %v212_v46 = vadd.f32 3.0, %v148_v28  ;;  %v213_v47 = vadd.f32 3.0, %v149_v29  ;;  %v214_v48 = vadd.f32 3.0, %v150_v34  ;;  %v215_v49 = vadd.f32 3.0, %v151_v35 }
  0x40   : > { %462 = vst [vmem:[%s914_s17 + $0x20] sm:$0xff] %v398_v40  ;;  %463 = vst [vmem:[%s914_s17 + $0x28] sm:$0xff] %v399_v41  ;;  %v400_v52 = vmul.f32 0.16666667, %v336_v42  ;;  %v401_v53 = vmul.f32 0.16666667, %v337_v43 }
  0x41   : > { %v274_v54 = vmax.f32 %v210_v44, 0.0  ;;  %v275_v55 = vmax.f32 %v211_v45, 0.0  ;;  %v276_v56 = vmax.f32 %v212_v46, 0.0  ;;  %v277_v57 = vmax.f32 %v213_v47, 0.0  ;;  %v154_v60 = vld [vmem:[%s892_s30 + $0x80] sm:$0xff]  ;;  %v155_v1 = vld [vmem:[%s892_s30 + $0x88] sm:$0xff] }
  0x42   : > { %v278_v58 = vmax.f32 %v214_v48, 0.0  ;;  %v279_v59 = vmax.f32 %v215_v49, 0.0  ;;  %464 = vst [vmem:[%s914_s17 + $0x30] sm:$0xff] %v400_v52  ;;  %465 = vst [vmem:[%s914_s17 + $0x38] sm:$0xff] %v401_v53  ;;  %v216_v63 = vadd.f32 3.0, %v152_v50  ;;  %v217_v0 = vadd.f32 3.0, %v153_v51 }
  0x43   : > { %v338_v61 = vmin.f32 %v274_v54, 6.0  ;;  %v339_v62 = vmin.f32 %v275_v55, 6.0  ;;  %v156_v2 = vld [vmem:[%s892_s30 + $0x90] sm:$0xff]  ;;  %v157_v3 = vld [vmem:[%s892_s30 + $0x98] sm:$0xff]  ;;  %v340_v4 = vmin.f32 %v276_v56, 6.0  ;;  %v341_v5 = vmin.f32 %v277_v57, 6.0 }
  0x44   : > { %v342_v6 = vmin.f32 %v278_v58, 6.0  ;;  %v343_v7 = vmin.f32 %v279_v59, 6.0  ;;  %v158_v8 = vld [vmem:[%s892_s30 + $0xa0] sm:$0xff]  ;;  %v159_v9 = vld [vmem:[%s892_s30 + $0xa8] sm:$0xff]  ;;  %v280_v12 = vmax.f32 %v216_v63, 0.0  ;;  %v281_v13 = vmax.f32 %v217_v0, 0.0 }
  0x45   : > { %v402_v10 = vmul.f32 0.16666667, %v338_v61  ;;  %v403_v11 = vmul.f32 0.16666667, %v339_v62  ;;  %v404_v14 = vmul.f32 0.16666667, %v340_v4 }
  0x46   : > { %v405_v15 = vmul.f32 0.16666667, %v341_v5  ;;  %v406_v16 = vmul.f32 0.16666667, %v342_v6  ;;  %v407_v17 = vmul.f32 0.16666667, %v343_v7 }
  0x47   : > { %466 = vst [vmem:[%s914_s17 + $0x40] sm:$0xff] %v402_v10  ;;  %467 = vst [vmem:[%s914_s17 + $0x48] sm:$0xff] %v403_v11  ;;  %v344_v18 = vmin.f32 %v280_v12, 6.0  ;;  %v345_v19 = vmin.f32 %v281_v13, 6.0  ;;  %v218_v20 = vadd.f32 3.0, %v154_v60  ;;  %v219_v21 = vadd.f32 3.0, %v155_v1 }
  0x48   : > { %468 = vst [vmem:[%s914_s17 + $0x50] sm:$0xff] %v404_v14  ;;  %469 = vst [vmem:[%s914_s17 + $0x58] sm:$0xff] %v405_v15  ;;  %v220_v22 = vadd.f32 3.0, %v156_v2  ;;  %v221_v23 = vadd.f32 3.0, %v157_v3  ;;  %v222_v24 = vadd.f32 3.0, %v158_v8  ;;  %v160_v25 = vld [vmem:[%s892_s30 + $0xb0] sm:$0xff] }
  0x49   : > { %470 = vst [vmem:[%s914_s17 + $0x60] sm:$0xff] %v406_v16  ;;  %v161_v26 = vld [vmem:[%s892_s30 + $0xb8] sm:$0xff]  ;;  %471 = vst [vmem:[%s914_s17 + $0x68] sm:$0xff] %v407_v17  ;;  %v408_v27 = vmul.f32 0.16666667, %v344_v18  ;;  %v282_v29 = vmax.f32 %v218_v20, 0.0 }
  0x4a   : > { %v409_v28 = vmul.f32 0.16666667, %v345_v19  ;;  %v223_v30 = vadd.f32 3.0, %v159_v9  ;;  %v283_v31 = vmax.f32 %v219_v21, 0.0  ;;  %v284_v32 = vmax.f32 %v220_v22, 0.0  ;;  %v162_v39 = vld [vmem:[%s892_s30 + $0xc0] sm:$0xff] }
  0x4b   : > { %v285_v33 = vmax.f32 %v221_v23, 0.0  ;;  %v286_v34 = vmax.f32 %v222_v24, 0.0  ;;  %472 = vst [vmem:[%s914_s17 + $0x70] sm:$0xff] %v408_v27  ;;  %v346_v35 = vmin.f32 %v282_v29, 6.0  ;;  %v224_v37 = vadd.f32 3.0, %v160_v25  ;;  %v163_v40 = vld [vmem:[%s892_s30 + $0xc8] sm:$0xff] }
  0x4c   : > { %473 = vst [vmem:[%s914_s17 + $0x78] sm:$0xff] %v409_v28  ;;  %v287_v36 = vmax.f32 %v223_v30, 0.0  ;;  %v225_v38 = vadd.f32 3.0, %v161_v26  ;;  %v164_v41 = vld [vmem:[%s892_s30 + $0xd0] sm:$0xff]  ;;  %v347_v42 = vmin.f32 %v283_v31, 6.0  ;;  %v348_v43 = vmin.f32 %v284_v32, 6.0 }
  0x4d   : > { %v349_v44 = vmin.f32 %v285_v33, 6.0  ;;  %v350_v45 = vmin.f32 %v286_v34, 6.0  ;;  %v165_v46 = vld [vmem:[%s892_s30 + $0xd8] sm:$0xff]  ;;  %v166_v47 = vld [vmem:[%s892_s30 + $0xe0] sm:$0xff]  ;;  %v410_v48 = vmul.f32 0.16666667, %v346_v35 }
  0x4e   : > { %v351_v49 = vmin.f32 %v287_v36, 6.0  ;;  %v288_v50 = vmax.f32 %v224_v37, 0.0  ;;  %v289_v51 = vmax.f32 %v225_v38, 0.0  ;;  %v167_v52 = vld [vmem:[%s892_s30 + $0xe8] sm:$0xff]  ;;  %v411_v53 = vmul.f32 0.16666667, %v347_v42 }
  0x4f   : > { %v412_v54 = vmul.f32 0.16666667, %v348_v43  ;;  %v413_v55 = vmul.f32 0.16666667, %v349_v44  ;;  %474 = vst [vmem:[%s914_s17 + $0x80] sm:$0xff] %v410_v48  ;;  %v226_v60 = vadd.f32 3.0, %v162_v39 }
  0x50   : > { %v414_v56 = vmul.f32 0.16666667, %v350_v45  ;;  %v415_v57 = vmul.f32 0.16666667, %v351_v49  ;;  %v352_v58 = vmin.f32 %v288_v50, 6.0  ;;  %v353_v59 = vmin.f32 %v289_v51, 6.0 }
  0x51   : > { %475 = vst [vmem:[%s914_s17 + $0x88] sm:$0xff] %v411_v53  ;;  %476 = vst [vmem:[%s914_s17 + $0x90] sm:$0xff] %v412_v54  ;;  %v227_v61 = vadd.f32 3.0, %v163_v40  ;;  %v228_v62 = vadd.f32 3.0, %v164_v41  ;;  %v229_v63 = vadd.f32 3.0, %v165_v46  ;;  %v168_v0 = vld [vmem:[%s892_s30 + $0xf0] sm:$0xff] }
  0x52   : > { %477 = vst [vmem:[%s914_s17 + $0x98] sm:$0xff] %v413_v55  ;;  %v169_v1 = vld [vmem:[%s892_s30 + $0xf8] sm:$0xff]  ;;  %478 = vst [vmem:[%s914_s17 + $0xa0] sm:$0xff] %v414_v56  ;;  %v416_v2 = vmul.f32 0.16666667, %v352_v58  ;;  %v230_v4 = vadd.f32 3.0, %v166_v47 }
  0x53   : > { %479 = vst [vmem:[%s914_s17 + $0xa8] sm:$0xff] %v415_v57  ;;  %v417_v3 = vmul.f32 0.16666667, %v353_v59  ;;  %v231_v5 = vadd.f32 3.0, %v167_v52  ;;  %v290_v6 = vmax.f32 %v226_v60, 0.0  ;;  %v291_v7 = vmax.f32 %v227_v61, 0.0 }
  0x54   : > { %v292_v8 = vmax.f32 %v228_v62, 0.0  ;;  %v293_v9 = vmax.f32 %v229_v63, 0.0  ;;  %480 = vst [vmem:[%s914_s17 + $0xb0] sm:$0xff] %v416_v2  ;;  %v294_v10 = vmax.f32 %v230_v4, 0.0  ;;  %v232_v12 = vadd.f32 3.0, %v168_v0  ;;  %v170_v14 = vld [vmem:[%s892_s30 + $0x100] sm:$0xff] }
  0x55   : > { %481 = vst [vmem:[%s914_s17 + $0xb8] sm:$0xff] %v417_v3  ;;  %v295_v11 = vmax.f32 %v231_v5, 0.0  ;;  %v233_v13 = vadd.f32 3.0, %v169_v1  ;;  %v171_v15 = vld [vmem:[%s892_s30 + $0x108] sm:$0xff]  ;;  %v354_v16 = vmin.f32 %v290_v6, 6.0  ;;  %v355_v17 = vmin.f32 %v291_v7, 6.0 }
  0x56   : > { %v356_v18 = vmin.f32 %v292_v8, 6.0  ;;  %v357_v19 = vmin.f32 %v293_v9, 6.0  ;;  %v172_v20 = vld [vmem:[%s892_s30 + $0x110] sm:$0xff]  ;;  %v173_v21 = vld [vmem:[%s892_s30 + $0x118] sm:$0xff]  ;;  %v358_v22 = vmin.f32 %v294_v10, 6.0  ;;  %v296_v24 = vmax.f32 %v232_v12, 0.0 }
  0x57   : > { %v359_v23 = vmin.f32 %v295_v11, 6.0  ;;  %v297_v25 = vmax.f32 %v233_v13, 0.0  ;;  %v174_v26 = vld [vmem:[%s892_s30 + $0x120] sm:$0xff]  ;;  %v175_v27 = vld [vmem:[%s892_s30 + $0x128] sm:$0xff]  ;;  %v418_v28 = vmul.f32 0.16666667, %v354_v16 }
  0x58   : > { %v419_v29 = vmul.f32 0.16666667, %v355_v17  ;;  %v420_v30 = vmul.f32 0.16666667, %v356_v18  ;;  %v421_v31 = vmul.f32 0.16666667, %v357_v19 }
  0x59   : > { %v422_v32 = vmul.f32 0.16666667, %v358_v22  ;;  %v423_v33 = vmul.f32 0.16666667, %v359_v23  ;;  %482 = vst [vmem:[%s914_s17 + $0xc0] sm:$0xff] %v418_v28  ;;  %v360_v34 = vmin.f32 %v296_v24, 6.0 }
  0x5a   : > { %483 = vst [vmem:[%s914_s17 + $0xc8] sm:$0xff] %v419_v29  ;;  %484 = vst [vmem:[%s914_s17 + $0xd0] sm:$0xff] %v420_v30  ;;  %v361_v35 = vmin.f32 %v297_v25, 6.0  ;;  %v234_v36 = vadd.f32 3.0, %v170_v14  ;;  %v235_v37 = vadd.f32 3.0, %v171_v15  ;;  %v236_v38 = vadd.f32 3.0, %v172_v20 }
  0x5b   : > { %485 = vst [vmem:[%s914_s17 + $0xd8] sm:$0xff] %v421_v31  ;;  %486 = vst [vmem:[%s914_s17 + $0xe0] sm:$0xff] %v422_v32  ;;  %v237_v39 = vadd.f32 3.0, %v173_v21  ;;  %v238_v40 = vadd.f32 3.0, %v174_v26  ;;  %v239_v41 = vadd.f32 3.0, %v175_v27  ;;  %v176_v42 = vld [vmem:[%s892_s30 + $0x130] sm:$0xff] }
  0x5c   : > { %487 = vst [vmem:[%s914_s17 + $0xe8] sm:$0xff] %v423_v33  ;;  %v177_v43 = vld [vmem:[%s892_s30 + $0x138] sm:$0xff]  ;;  %v424_v44 = vmul.f32 0.16666667, %v360_v34  ;;  %v425_v45 = vmul.f32 0.16666667, %v361_v35 }
  0x5d   : > { %v298_v46 = vmax.f32 %v234_v36, 0.0  ;;  %v299_v47 = vmax.f32 %v235_v37, 0.0  ;;  %v300_v48 = vmax.f32 %v236_v38, 0.0  ;;  %v301_v49 = vmax.f32 %v237_v39, 0.0  ;;  %v178_v52 = vld [vmem:[%s892_s30 + $0x140] sm:$0xff]  ;;  %v179_v57 = vld [vmem:[%s892_s30 + $0x148] sm:$0xff] }
  0x5e   : > { %v302_v50 = vmax.f32 %v238_v40, 0.0  ;;  %v303_v51 = vmax.f32 %v239_v41, 0.0  ;;  %488 = vst [vmem:[%s914_s17 + $0xf0] sm:$0xff] %v424_v44  ;;  %489 = vst [vmem:[%s914_s17 + $0xf8] sm:$0xff] %v425_v45  ;;  %v240_v55 = vadd.f32 3.0, %v176_v42  ;;  %v241_v56 = vadd.f32 3.0, %v177_v43 }
  0x5f   : > { %v362_v53 = vmin.f32 %v298_v46, 6.0  ;;  %v363_v54 = vmin.f32 %v299_v47, 6.0  ;;  %v180_v58 = vld [vmem:[%s892_s30 + $0x150] sm:$0xff]  ;;  %v181_v59 = vld [vmem:[%s892_s30 + $0x158] sm:$0xff]  ;;  %v364_v60 = vmin.f32 %v300_v48, 6.0  ;;  %v365_v61 = vmin.f32 %v301_v49, 6.0 }
  0x60   : > { %v366_v62 = vmin.f32 %v302_v50, 6.0  ;;  %v367_v63 = vmin.f32 %v303_v51, 6.0  ;;  %v182_v0 = vld [vmem:[%s892_s30 + $0x160] sm:$0xff]  ;;  %v183_v1 = vld [vmem:[%s892_s30 + $0x168] sm:$0xff]  ;;  %v304_v4 = vmax.f32 %v240_v55, 0.0  ;;  %v305_v5 = vmax.f32 %v241_v56, 0.0 }
  0x61   : > { %v426_v2 = vmul.f32 0.16666667, %v362_v53  ;;  %v427_v3 = vmul.f32 0.16666667, %v363_v54  ;;  %v428_v6 = vmul.f32 0.16666667, %v364_v60 }
  0x62   : > { %v429_v7 = vmul.f32 0.16666667, %v365_v61  ;;  %v430_v8 = vmul.f32 0.16666667, %v366_v62  ;;  %v431_v9 = vmul.f32 0.16666667, %v367_v63 }
  0x63   : > { %490 = vst [vmem:[%s914_s17 + $0x100] sm:$0xff] %v426_v2  ;;  %491 = vst [vmem:[%s914_s17 + $0x108] sm:$0xff] %v427_v3  ;;  %v368_v10 = vmin.f32 %v304_v4, 6.0  ;;  %v369_v11 = vmin.f32 %v305_v5, 6.0  ;;  %v242_v12 = vadd.f32 3.0, %v178_v52  ;;  %v243_v13 = vadd.f32 3.0, %v179_v57 }
  0x64   : > { %492 = vst [vmem:[%s914_s17 + $0x110] sm:$0xff] %v428_v6  ;;  %493 = vst [vmem:[%s914_s17 + $0x118] sm:$0xff] %v429_v7  ;;  %v244_v14 = vadd.f32 3.0, %v180_v58  ;;  %v245_v15 = vadd.f32 3.0, %v181_v59  ;;  %v246_v16 = vadd.f32 3.0, %v182_v0  ;;  %v184_v17 = vld [vmem:[%s892_s30 + $0x170] sm:$0xff] }
  0x65   : > { %494 = vst [vmem:[%s914_s17 + $0x120] sm:$0xff] %v430_v8  ;;  %v185_v18 = vld [vmem:[%s892_s30 + $0x178] sm:$0xff]  ;;  %495 = vst [vmem:[%s914_s17 + $0x128] sm:$0xff] %v431_v9  ;;  %v432_v19 = vmul.f32 0.16666667, %v368_v10  ;;  %v306_v21 = vmax.f32 %v242_v12, 0.0 }
  0x66   : > { %v433_v20 = vmul.f32 0.16666667, %v369_v11  ;;  %v247_v22 = vadd.f32 3.0, %v183_v1  ;;  %v307_v23 = vmax.f32 %v243_v13, 0.0  ;;  %v308_v24 = vmax.f32 %v244_v14, 0.0  ;;  %v186_v31 = vld [vmem:[%s892_s30 + $0x180] sm:$0xff] }
  0x67   : > { %v309_v25 = vmax.f32 %v245_v15, 0.0  ;;  %v310_v26 = vmax.f32 %v246_v16, 0.0  ;;  %496 = vst [vmem:[%s914_s17 + $0x130] sm:$0xff] %v432_v19  ;;  %v370_v27 = vmin.f32 %v306_v21, 6.0  ;;  %v248_v29 = vadd.f32 3.0, %v184_v17  ;;  %v187_v32 = vld [vmem:[%s892_s30 + $0x188] sm:$0xff] }
  0x68   : > { %497 = vst [vmem:[%s914_s17 + $0x138] sm:$0xff] %v433_v20  ;;  %v311_v28 = vmax.f32 %v247_v22, 0.0  ;;  %v249_v30 = vadd.f32 3.0, %v185_v18  ;;  %v188_v33 = vld [vmem:[%s892_s30 + $0x190] sm:$0xff]  ;;  %v371_v34 = vmin.f32 %v307_v23, 6.0  ;;  %v372_v35 = vmin.f32 %v308_v24, 6.0 }
  0x69   : > { %v373_v36 = vmin.f32 %v309_v25, 6.0  ;;  %v374_v37 = vmin.f32 %v310_v26, 6.0  ;;  %v189_v38 = vld [vmem:[%s892_s30 + $0x198] sm:$0xff]  ;;  %v190_v39 = vld [vmem:[%s892_s30 + $0x1a0] sm:$0xff]  ;;  %v434_v40 = vmul.f32 0.16666667, %v370_v27 }
  0x6a   : > { %v375_v41 = vmin.f32 %v311_v28, 6.0  ;;  %v312_v42 = vmax.f32 %v248_v29, 0.0  ;;  %v313_v43 = vmax.f32 %v249_v30, 0.0  ;;  %v191_v44 = vld [vmem:[%s892_s30 + $0x1a8] sm:$0xff]  ;;  %v435_v45 = vmul.f32 0.16666667, %v371_v34 }
  0x6b   : > { %v436_v46 = vmul.f32 0.16666667, %v372_v35  ;;  %v437_v47 = vmul.f32 0.16666667, %v373_v36  ;;  %498 = vst [vmem:[%s914_s17 + $0x140] sm:$0xff] %v434_v40  ;;  %v250_v52 = vadd.f32 3.0, %v186_v31 }
  0x6c   : > { %v438_v48 = vmul.f32 0.16666667, %v374_v37  ;;  %v439_v49 = vmul.f32 0.16666667, %v375_v41  ;;  %v376_v50 = vmin.f32 %v312_v42, 6.0  ;;  %v377_v51 = vmin.f32 %v313_v43, 6.0 }
  0x6d   : > { %499 = vst [vmem:[%s914_s17 + $0x148] sm:$0xff] %v435_v45  ;;  %500 = vst [vmem:[%s914_s17 + $0x150] sm:$0xff] %v436_v46  ;;  %v251_v53 = vadd.f32 3.0, %v187_v32  ;;  %v252_v54 = vadd.f32 3.0, %v188_v33  ;;  %v253_v55 = vadd.f32 3.0, %v189_v38  ;;  %v192_v56 = vld [vmem:[%s892_s30 + $0x1b0] sm:$0xff] }
  0x6e   : > { %501 = vst [vmem:[%s914_s17 + $0x158] sm:$0xff] %v437_v47  ;;  %v193_v57 = vld [vmem:[%s892_s30 + $0x1b8] sm:$0xff]  ;;  %502 = vst [vmem:[%s914_s17 + $0x160] sm:$0xff] %v438_v48  ;;  %v440_v58 = vmul.f32 0.16666667, %v376_v50  ;;  %v254_v60 = vadd.f32 3.0, %v190_v39 }
  0x6f   : > { %503 = vst [vmem:[%s914_s17 + $0x168] sm:$0xff] %v439_v49  ;;  %v441_v59 = vmul.f32 0.16666667, %v377_v51  ;;  %v255_v61 = vadd.f32 3.0, %v191_v44  ;;  %v314_v62 = vmax.f32 %v250_v52, 0.0  ;;  %v315_v63 = vmax.f32 %v251_v53, 0.0 }
  0x70   : > { %v316_v0 = vmax.f32 %v252_v54, 0.0  ;;  %v317_v1 = vmax.f32 %v253_v55, 0.0  ;;  %504 = vst [vmem:[%s914_s17 + $0x170] sm:$0xff] %v440_v58  ;;  %v318_v2 = vmax.f32 %v254_v60, 0.0  ;;  %v256_v4 = vadd.f32 3.0, %v192_v56  ;;  %v194_v6 = vld [vmem:[%s892_s30 + $0x1c0] sm:$0xff] }
  0x71   : > { %505 = vst [vmem:[%s914_s17 + $0x178] sm:$0xff] %v441_v59  ;;  %v319_v3 = vmax.f32 %v255_v61, 0.0  ;;  %v257_v5 = vadd.f32 3.0, %v193_v57  ;;  %v195_v7 = vld [vmem:[%s892_s30 + $0x1c8] sm:$0xff]  ;;  %v378_v8 = vmin.f32 %v314_v62, 6.0  ;;  %v379_v9 = vmin.f32 %v315_v63, 6.0 }
  0x72   : > { %v380_v10 = vmin.f32 %v316_v0, 6.0  ;;  %v381_v11 = vmin.f32 %v317_v1, 6.0  ;;  %v196_v12 = vld [vmem:[%s892_s30 + $0x1d0] sm:$0xff]  ;;  %v197_v13 = vld [vmem:[%s892_s30 + $0x1d8] sm:$0xff]  ;;  %v382_v14 = vmin.f32 %v318_v2, 6.0  ;;  %v320_v16 = vmax.f32 %v256_v4, 0.0 }
  0x73   : > { %v383_v15 = vmin.f32 %v319_v3, 6.0  ;;  %v321_v17 = vmax.f32 %v257_v5, 0.0  ;;  %v198_v18 = vld [vmem:[%s892_s30 + $0x1e0] sm:$0xff]  ;;  %v199_v19 = vld [vmem:[%s892_s30 + $0x1e8] sm:$0xff]  ;;  %v442_v20 = vmul.f32 0.16666667, %v378_v8 }
  0x74   : > { %v443_v21 = vmul.f32 0.16666667, %v379_v9  ;;  %v444_v22 = vmul.f32 0.16666667, %v380_v10  ;;  %v445_v23 = vmul.f32 0.16666667, %v381_v11 }
  0x75   : > { %v446_v24 = vmul.f32 0.16666667, %v382_v14  ;;  %v447_v25 = vmul.f32 0.16666667, %v383_v15  ;;  %506 = vst [vmem:[%s914_s17 + $0x180] sm:$0xff] %v442_v20  ;;  %v384_v26 = vmin.f32 %v320_v16, 6.0 }
  0x76   : > { %507 = vst [vmem:[%s914_s17 + $0x188] sm:$0xff] %v443_v21  ;;  %508 = vst [vmem:[%s914_s17 + $0x190] sm:$0xff] %v444_v22  ;;  %v385_v27 = vmin.f32 %v321_v17, 6.0  ;;  %v258_v28 = vadd.f32 3.0, %v194_v6  ;;  %v259_v29 = vadd.f32 3.0, %v195_v7  ;;  %v260_v30 = vadd.f32 3.0, %v196_v12 }
  0x77   : > { %509 = vst [vmem:[%s914_s17 + $0x198] sm:$0xff] %v445_v23  ;;  %510 = vst [vmem:[%s914_s17 + $0x1a0] sm:$0xff] %v446_v24  ;;  %v261_v31 = vadd.f32 3.0, %v197_v13  ;;  %v262_v32 = vadd.f32 3.0, %v198_v18  ;;  %v263_v33 = vadd.f32 3.0, %v199_v19  ;;  %v200_v34 = vld [vmem:[%s892_s30 + $0x1f0] sm:$0xff] }
  0x78   : > { %511 = vst [vmem:[%s914_s17 + $0x1a8] sm:$0xff] %v447_v25  ;;  %v201_v35 = vld [vmem:[%s892_s30 + $0x1f8] sm:$0xff]  ;;  %v448_v36 = vmul.f32 0.16666667, %v384_v26  ;;  %v449_v37 = vmul.f32 0.16666667, %v385_v27 }
  0x79   : > { %v322_v38 = vmax.f32 %v258_v28, 0.0  ;;  %v323_v39 = vmax.f32 %v259_v29, 0.0  ;;  %v324_v40 = vmax.f32 %v260_v30, 0.0  ;;  %v325_v41 = vmax.f32 %v261_v31, 0.0  ;;  %s523_s2 = scalar_lea.sflag [#allocation4], %s886_s23  ;;  %s708_s3 = scalar_lea.vmem %s1034_s27, 8192 }
  0x7a   : > { %v326_v42 = vmax.f32 %v262_v32, 0.0  ;;  %v327_v43 = vmax.f32 %v263_v33, 0.0  ;;  %512 = vst [vmem:[%s914_s17 + $0x1b0] sm:$0xff] %v448_v36  ;;  %513 = vst [vmem:[%s914_s17 + $0x1b8] sm:$0xff] %v449_v37  ;;  %v264_v46 = vadd.f32 3.0, %v200_v34  ;;  %v265_v47 = vadd.f32 3.0, %v201_v35  ;;  %p709_p10 = scmp.ne.s32.totalorder %s1034_s27, %s708_s3 }
  0x7b   : > { %v386_v44 = vmin.f32 %v322_v38, 6.0  ;;  %v387_v45 = vmin.f32 %v323_v39, 6.0  ;;  %v388_v48 = vmin.f32 %v324_v40, 6.0  ;;  %v389_v49 = vmin.f32 %v325_v41, 6.0  ;;  %p1089_p11 = scmp.ne.s32.totalorder %s1085_s18, 0  ;;  %s777_s4 = smov [#allocation5]  }
  0x7c   : > { %v390_v50 = vmin.f32 %v326_v42, 6.0  ;;  %v391_v51 = vmin.f32 %v327_v43, 6.0  ;;  %v328_v54 = vmax.f32 %v264_v46, 0.0  ;;  %v329_v55 = vmax.f32 %v265_v47, 0.0  ;;  %s712_s5 = sshll.u32 %s777_s4, 4  ;;  %s713_s5 = int_to_ptr.vmem [resolvable:$false] %s712_s5 }
  0x7d   : > { %v450_v52 = vmul.f32 0.16666667, %v386_v44  ;;  %v451_v53 = vmul.f32 0.16666667, %v387_v45  ;;  %v452_v56 = vmul.f32 0.16666667, %v388_v48  ;;  %p710_p12 = pnand %p709_p10, %p1089_p11  ;;  %p715_p5 = scmp.lt.s32.totalorder %s1034_s27, %s713_s5 }
  0x7e   : > { %v453_v57 = vmul.f32 0.16666667, %v389_v49  ;;  %v454_v58 = vmul.f32 0.16666667, %v390_v50  ;;  %v455_v59 = vmul.f32 0.16666667, %v391_v51 }
  0x7f   : > { %514 = vst [vmem:[%s914_s17 + $0x1c0] sm:$0xff] %v450_v52  ;;  %515 = vst [vmem:[%s914_s17 + $0x1c8] sm:$0xff] %v451_v53  ;;  %v392_v60 = vmin.f32 %v328_v54, 6.0  ;;  %v393_v61 = vmin.f32 %v329_v55, 6.0  ;;  %p711_p4 = pneg %p710_p12  ;;  %s714_s11 = scalar_lea.vmem %s713_s5, 16384 }
  0x80   : > { %516 = vst [vmem:[%s914_s17 + $0x1d0] sm:$0xff] %v452_v56  ;;  %517 = vst [vmem:[%s914_s17 + $0x1d8] sm:$0xff] %v453_v57  ;;  %p716_p7 = scmp.lt.s32.totalorder %s714_s11, %s708_s3 }
  0x81   : > { %518 = vst [vmem:[%s914_s17 + $0x1e0] sm:$0xff] %v454_v58  ;;  %519 = vst [vmem:[%s914_s17 + $0x1e8] sm:$0xff] %v455_v59  ;;  %v456_v62 = vmul.f32 0.16666667, %v392_v60  ;;  %v457_v63 = vmul.f32 0.16666667, %v393_v61 }
  0x82   : > { %p717_p8 = por %p716_p7, %p715_p5 }
  0x83   : > { %520 = vst [vmem:[%s914_s17 + $0x1f0] sm:$0xff] %v456_v62  ;;  %521 = vst [vmem:[%s914_s17 + $0x1f8] sm:$0xff] %v457_v63 }
  0x84   : > { %p718_p9 = pnand %p717_p8, %p711_p4 }
  0x86   : > { %721 = shalt.err (!%p718_p9)
}
  0x87   : > { %s722_s13 = scalar_lea.hbm %s1032_s29, 8192  ;;  %s726_s20 = scalar_lea.hbm %s1080_s1, 32768 }
  0x88   : > { %p723_p13 = scmp.ne.s32.totalorder %s1032_s29, %s722_s13  ;;  %p727_p2 = scmp.lt.s32.totalorder %s1032_s29, %s1080_s1 }
  0x89   : > { %p728_p3 = scmp.lt.s32.totalorder %s726_s20, %s722_s13 }
  0x8a   : > { %p724_p1 = pnand %p723_p13, %p1089_p11 }
  0x8b   : > { %p729_p6 = por %p728_p3, %p727_p2 }
  0x8c   : > { %p725_p0 = pneg %p724_p1 }
  0x8e   : > { %p730_p10 = pnand %p729_p6, %p725_p0 }
  0x90   : > { %733 = shalt.err (!%p730_p10)
}
  0x91   : > { %s778_s24 = smov 1024   ;;  %s779_s26 = smov 64  }
  0x92   : > { %632 = dma.vmem_to_hbm [thread:$0]  (%p1089_p11), %s1034_s27, 8192, %s1032_s29, %s523_s2, %s778_s24, %s778_s24, %s779_s26  }
  0x93 PF: > { %p643_p12 = scmp.ge.s32.totalorder %s772_s9, 2  ;;  %s552_s30 = sand.u32 1, %s760_s6  }
  0x94   : > { %p1090_p4 = scmp.ne.s32.totalorder %s1086_s19, 0  ;;  %s553_s17 = scalar_lea.sflag [#allocation4], %s552_s30 }
  0x96   : > { %p639_p5 = pnand %p643_p12, %p1090_p4 }
  0x98   : > { %p640_p7 = pneg %p639_p5 }
  0x9a   : > { %755 = dma.done.wait (%p640_p7), %s553_s17, 8192  }
  0x9b   : > { %757 = vsyncadd (%p640_p7), %s553_s17, 4294959104  ;;  %p14_p8 = scmp.ge.s32.totalorder %s815_s12, 6   ;;  %s1091_s6 = smov %s764_s7 }
  0x9c   : > { %s1092_s7 = smov %s768_s8  ;;  %s1093_s8 = smov %s827_s15 }
  0x9d   : > { %s1094_s9 = smov %s815_s12  ;;  %16 = sbr.rel (!%p14_p8) target bundleno = 5 (0x5), region = 69 }
  0xa2   :  { %558 = vsyncpa [#allocation3], 1 }
  0xa3   :  { %560 = vsyncpa [#allocation3 + $0x1], 1 }
  0xa4   :  { %561 = vsyncpa [#allocation4], 1 }
  0xa5   :  { %563 = vsyncpa [#allocation4 + $0x1], 1 }

</bundles_post_ra>
